<compile_context>
chip_gen: v6e
topology: v6e:2x2x1
jax: 0.10.0
libtpu: 0.0.40
codegen_flags: <defaults>
</compile_context>

<pallas_src>
import functools

import jax
import jax.numpy as jnp
from jax.experimental import pallas as pl
from jax.experimental.pallas import tpu as pltpu

HIDDEN = 128


def _cdiv(a, b):
    return -(-a // b)


def _round_up(x, m):
    return _cdiv(x, m) * m


def _choose_tiling(batch):
    """Pick (tile_b, padded_batch) purely for overhead/padding, not capacity.

    VMEM footprint here is <1 MiB (weights ~132 KB f32 plus tiny x/out tiles),
    so tiles are sized only to (a) avoid padding waste for ragged batches,
    (b) amortize the ~0.35 us/grid-step cost, (c) give an even multi-tile grid
    for v7x megacore on large batches.  Multi-tile => tile_b must be a multiple
    of 128 because tile_b is the *lane* dim of the transposed output block.
    """
    if batch <= 2048:
        tile_b = _round_up(batch, 8)            # single tile, <=7 padded rows
    else:
        n_tiles = max(2, 2 * _cdiv(batch, 2 * 2048))   # even count, ~<=2048 rows each
        tile_b = _round_up(_cdiv(batch, n_tiles), 128)  # lane-aligned tiles
    return tile_b, _round_up(batch, tile_b)


def dqn_kernel(x_ref, w1_ref, b1_ref, w2_ref, b2_ref, w3t_ref, b3_ref, o_ref):
    # Cast x to the param dtype in-kernel: free VPU work hidden under the MXU,
    # and it removes a wrapper-side full HBM read+write of x on the bf16 path.
    x = x_ref[...].astype(w1_ref.dtype)

    # Layers 1 & 2: MXU matmuls with f32 accumulation; bias add + ReLU stay in
    # the f32 accumulator (right for v5e's f32-only VPU), activations re-cast
    # to the param dtype only to feed the next MXU op.
    h1 = jnp.dot(x, w1_ref[...], preferred_element_type=jnp.float32) + b1_ref[...]
    h1 = jnp.maximum(h1, 0.0).astype(w2_ref.dtype)
    h2 = jnp.dot(h1, w2_ref[...], preferred_element_type=jnp.float32) + b2_ref[...]
    h2 = jnp.maximum(h2, 0.0).astype(w3t_ref.dtype)

    # Layer 3, computed transposed:  out^T[j, i] = sum_k w3t[j, k] * h2[i, k]
    # (an A.B^T contraction, same pattern the MXU runs for attention scores).
    # The (out_dim, tile_b) result is lane-dense along the batch, so the store
    # and HBM writeback are exactly out_dim*tile_b*4 bytes -- no 128-wide
    # padded slab and no masked lane stores.
    out_t = jax.lax.dot_general(
        w3t_ref[...], h2,
        dimension_numbers=(((1,), (1,)), ((), ())),
        preferred_element_type=jnp.float32,
    ) + b3_ref[...]                      # b3 is (out_dim, 1): broadcast over lanes
    o_ref[...] = out_t.astype(o_ref.dtype)


@functools.partial(jax.jit, static_argnames=("tile_b",))
def dqn_forward(x, params, *, tile_b=None):
    """x: (B, input_dim) float32; params: dict (f32, or bf16 on v6e/v7x).

    Returns (B, output_dim) float32 Q-values.
    """
    w1, b1, w2, b2, w3t, b3 = (
        params["w1"], params["b1"], params["w2"],
        params["b2"], params["w3t"], params["b3"],
    )
    batch, in_dim = x.shape
    out_dim = w3t.shape[0]

    if tile_b is None:
        tile_b, b_pad = _choose_tiling(batch)
    else:
        tile_b = _round_up(max(tile_b, 8), 8)
        if _round_up(batch, tile_b) > tile_b:       # multi-tile grid
            tile_b = _round_up(tile_b, 128)         # lane-aligned output tiles
        b_pad = _round_up(batch, tile_b)

    if b_pad != batch:
        # TODO(synk): rely on Pallas' masked edge blocks to drop this tiny copy.
        x = jnp.pad(x, ((0, b_pad - batch), (0, 0)))

    grid = (b_pad // tile_b,)

    # Weights/biases: constant index_map -> one DMA each, then resident in VMEM.
    resident = lambda a: pl.BlockSpec(a.shape, lambda i: (0,) * a.ndim)

    out_t = pl.pallas_call(
        dqn_kernel,
        out_shape=jax.ShapeDtypeStruct((out_dim, b_pad), jnp.float32),
        grid=grid,
        in_specs=[
            pl.BlockSpec((tile_b, in_dim), lambda i: (i, 0)),   # x tile, pipelined
            resident(w1), resident(b1),
            resident(w2), resident(b2),
            resident(w3t), resident(b3),
        ],
        out_specs=pl.BlockSpec((out_dim, tile_b), lambda i: (0, i)),
        compiler_params=pltpu.CompilerParams(
            dimension_semantics=("parallel",),      # megacore sharding on v7x
        ),
    )(x, w1, b1, w2, b2, w3t, b3)

    # TODO(synk): for true online inference (B~1-32) the call is dominated by
    # launch + weight DMA; fuse online+target nets / many env states per call
    # or keep weights pinned across calls instead of tuning tile_b.
    return out_t[:, :batch].T            # tiny (out_dim, B) transpose in XLA


def init_dqn_params(key, input_dim, output_dim, dtype=jnp.float32):
    """Mirrors torch.nn.Linear init: U(-1/sqrt(fan_in), 1/sqrt(fan_in)).

    bf16 is the recommended dtype on v6e/v7x (halves weight DMA, native MXU
    inputs); f32 matches the PyTorch module exactly.  w3 is stored in PyTorch
    layout (out_features, in_features) for the transposed final matmul.
    """
    def linear(k, fan_in, fan_out, transposed=False):
        kw, kb = jax.random.split(k)
        bound = 1.0 / (fan_in ** 0.5)
        wshape = (fan_out, fan_in) if transposed else (fan_in, fan_out)
        bshape = (fan_out, 1) if transposed else (1, fan_out)
        w = jax.random.uniform(kw, wshape, jnp.float32, -bound, bound)
        b = jax.random.uniform(kb, bshape, jnp.float32, -bound, bound)
        return w.astype(dtype), b.astype(dtype)

    k1, k2, k3 = jax.random.split(key, 3)
    w1, b1 = linear(k1, input_dim, HIDDEN)
    w2, b2 = linear(k2, HIDDEN, HIDDEN)
    w3t, b3 = linear(k3, HIDDEN, output_dim, transposed=True)
    return {"w1": w1, "b1": b1, "w2": w2, "b2": b2, "w3t": w3t, "b3": b3}


def _reference_forward(x, params):
    """Plain-JAX reference with the same dtype/casting policy as the kernel."""
    p = params
    hi = jax.lax.Precision.HIGHEST       # match the kernel's full-precision MXU use
    h = x.astype(p["w1"].dtype)
    h = jnp.dot(h, p["w1"], preferred_element_type=jnp.float32, precision=hi) + p["b1"]
    h = jnp.maximum(h, 0.0).astype(p["w2"].dtype)
    h = jnp.dot(h, p["w2"], preferred_element_type=jnp.float32, precision=hi) + p["b2"]
    h = jnp.maximum(h, 0.0).astype(p["w3t"].dtype)
    return jnp.dot(h, p["w3t"].T, preferred_element_type=jnp.float32,
                   precision=hi) + p["b3"].T


if __name__ == "__main__":
    key = jax.random.PRNGKey(0)
    k_params, k_x, k_xl = jax.random.split(key, 3)

    input_dim = 16   # synthetic Flappy-Bird-style state dim
    output_dim = 2   # flap / no-flap Q-values

    params_f32 = init_dqn_params(k_params, input_dim, output_dim, jnp.float32)

    # --- small batch (B=2), f32: matches the PyTorch module semantics --------
    x = jax.random.normal(k_x, (2, input_dim), jnp.float32)
    out = jax.block_until_ready(dqn_forward(x, params_f32))
    ref = _reference_forward(x, params_f32)
    assert out.shape == (2, output_dim)
    assert jnp.allclose(out, ref, atol=1e-4, rtol=1e-4)

    # --- ragged batch (B=300): adaptive single 304-row tile (4 padded rows) --
    xl = jax.random.normal(k_xl, (300, input_dim), jnp.float32)
    out_l = jax.block_until_ready(dqn_forward(xl, params_f32))
    ref_l = _reference_forward(xl, params_f32)
    assert out_l.shape == (300, output_dim)
    assert jnp.allclose(out_l, ref_l, atol=1e-4, rtol=1e-4)

    # --- explicit multi-tile grid (exercises lane-aligned tiles + grid > 1) --
    out_mt = jax.block_until_ready(dqn_forward(xl, params_f32, tile_b=128))
    assert out_mt.shape == (300, output_dim)
    assert jnp.allclose(out_mt, ref_l, atol=1e-4, rtol=1e-4)

    # --- bf16 params (recommended on v6e/v7x): f32 x in HBM, cast in-kernel --
    params_bf16 = jax.tree_util.tree_map(lambda a: a.astype(jnp.bfloat16), params_f32)
    out_bf = jax.block_until_ready(dqn_forward(xl, params_bf16))
    ref_bf = _reference_forward(xl, params_bf16)
    assert out_bf.shape == (300, output_dim)
    assert jnp.allclose(out_bf, ref_bf, atol=2e-2, rtol=2e-2)

    print("KERNEL_OK")
</pallas_src>

<mosaic_0001>
module attributes {stable_mosaic.version = 11 : i64} {
  func.func @dqn_kernel(%arg0: i32, %arg1: memref<8x16xf32, #tpu.memory_space<vmem>>, %arg2: memref<16x128xf32, #tpu.memory_space<vmem>>, %arg3: memref<1x128xf32, #tpu.memory_space<vmem>>, %arg4: memref<128x128xf32, #tpu.memory_space<vmem>>, %arg5: memref<1x128xf32, #tpu.memory_space<vmem>>, %arg6: memref<2x128xf32, #tpu.memory_space<vmem>>, %arg7: memref<2x1xf32, #tpu.memory_space<vmem>>, %arg8: memref<2x8xf32, #tpu.memory_space<vmem>>) attributes {dimension_semantics = [#tpu.dimension_semantics<parallel>], iteration_bounds = array<i64: 1>, scalar_prefetch = 0 : i64, scratch_operands = 0 : i64, tpu.core_type = #tpu.core_type<tc>, window_params = [{transform_indices = @transform_0, window_bounds = array<i64: 8, 16>}, {pipeline_mode = #tpu.pipeline_mode<synchronous>, transform_indices = @transform_1, window_bounds = array<i64: 16, 128>}, {pipeline_mode = #tpu.pipeline_mode<synchronous>, transform_indices = @transform_2, window_bounds = array<i64: 1, 128>}, {pipeline_mode = #tpu.pipeline_mode<synchronous>, transform_indices = @transform_3, window_bounds = array<i64: 128, 128>}, {pipeline_mode = #tpu.pipeline_mode<synchronous>, transform_indices = @transform_4, window_bounds = array<i64: 1, 128>}, {pipeline_mode = #tpu.pipeline_mode<synchronous>, transform_indices = @transform_5, window_bounds = array<i64: 2, 128>}, {pipeline_mode = #tpu.pipeline_mode<synchronous>, transform_indices = @transform_6, window_bounds = array<i64: 2, 1>}, {transform_indices = @transform_7, window_bounds = array<i64: 2, 8>}]} {
    %c0 = arith.constant 0 : index
    %c0_0 = arith.constant 0 : index
    %0 = vector.load %arg1[%c0, %c0_0] : memref<8x16xf32, #tpu.memory_space<vmem>>, vector<8x16xf32>
    %c0_1 = arith.constant 0 : index
    %c0_2 = arith.constant 0 : index
    %1 = vector.load %arg2[%c0_1, %c0_2] : memref<16x128xf32, #tpu.memory_space<vmem>>, vector<16x128xf32>
    %cst = arith.constant dense<0.000000e+00> : vector<8x128xf32>
    %2 = tpu.matmul %0, %1, %cst {dimension_numbers = #tpu.dot_dimension_numbers<[1], [0], [0], [1], [0, 0, 1, 1], [], []>} : vector<8x16xf32>, vector<16x128xf32>, vector<8x128xf32> -> vector<8x128xf32>
    %c0_3 = arith.constant 0 : index
    %c0_4 = arith.constant 0 : index
    %3 = vector.load %arg3[%c0_3, %c0_4] : memref<1x128xf32, #tpu.memory_space<vmem>>, vector<1x128xf32>
    %4 = vector.broadcast %3 : vector<1x128xf32> to vector<8x128xf32>
    %5 = arith.addf %2, %4 : vector<8x128xf32>
    %cst_5 = arith.constant 0.000000e+00 : f32
    %6 = vector.broadcast %cst_5 : f32 to vector<8x128xf32>
    %7 = arith.maximumf %5, %6 : vector<8x128xf32>
    %c0_6 = arith.constant 0 : index
    %c0_7 = arith.constant 0 : index
    %8 = vector.load %arg4[%c0_6, %c0_7] : memref<128x128xf32, #tpu.memory_space<vmem>>, vector<128x128xf32>
    %cst_8 = arith.constant dense<0.000000e+00> : vector<8x128xf32>
    %9 = tpu.matmul %7, %8, %cst_8 {dimension_numbers = #tpu.dot_dimension_numbers<[1], [0], [0], [1], [0, 0, 1, 1], [], []>} : vector<8x128xf32>, vector<128x128xf32>, vector<8x128xf32> -> vector<8x128xf32>
    %c0_9 = arith.constant 0 : index
    %c0_10 = arith.constant 0 : index
    %10 = vector.load %arg5[%c0_9, %c0_10] : memref<1x128xf32, #tpu.memory_space<vmem>>, vector<1x128xf32>
    %11 = vector.broadcast %10 : vector<1x128xf32> to vector<8x128xf32>
    %12 = arith.addf %9, %11 : vector<8x128xf32>
    %cst_11 = arith.constant 0.000000e+00 : f32
    %13 = vector.broadcast %cst_11 : f32 to vector<8x128xf32>
    %14 = arith.maximumf %12, %13 : vector<8x128xf32>
    %c0_12 = arith.constant 0 : index
    %c0_13 = arith.constant 0 : index
    %15 = vector.load %arg6[%c0_12, %c0_13] : memref<2x128xf32, #tpu.memory_space<vmem>>, vector<2x128xf32>
    %cst_14 = arith.constant dense<0.000000e+00> : vector<2x8xf32>
    %16 = tpu.matmul %15, %14, %cst_14 {dimension_numbers = #tpu.dot_dimension_numbers<[1], [1], [0], [0], [0, 0, 1, 0], [], []>} : vector<2x128xf32>, vector<8x128xf32>, vector<2x8xf32> -> vector<2x8xf32>
    %c0_15 = arith.constant 0 : index
    %c0_16 = arith.constant 0 : index
    %17 = vector.load %arg7[%c0_15, %c0_16] : memref<2x1xf32, #tpu.memory_space<vmem>>, vector<2x1xf32>
    %18 = vector.broadcast %17 : vector<2x1xf32> to vector<2x8xf32>
    %19 = arith.addf %16, %18 : vector<2x8xf32>
    %c0_17 = arith.constant 0 : index
    %c0_18 = arith.constant 0 : index
    %20 = vector.load %arg8[%c0_17, %c0_18] : memref<2x8xf32, #tpu.memory_space<vmem>>, vector<2x8xf32>
    tpu.vector_store %arg8[%c0_17, %c0_18], %19 {strides = array<i32>} : memref<2x8xf32, #tpu.memory_space<vmem>>, vector<2x8xf32>,
    return
  }
  func.func @transform_0(%arg0: i32) -> (i32, i32) {
    %c0_i32 = arith.constant 0 : i32
    %c0_i32_0 = arith.constant 0 : i32
    return %arg0, %c0_i32 : i32, i32
  }
  func.func @transform_1(%arg0: i32) -> (i32, i32) {
    %c0_i32 = arith.constant 0 : i32
    %c0_i32_0 = arith.constant 0 : i32
    %c0_i32_1 = arith.constant 0 : i32
    return %c0_i32, %c0_i32_0 : i32, i32
  }
  func.func @transform_2(%arg0: i32) -> (i32, i32) {
    %c0_i32 = arith.constant 0 : i32
    %c0_i32_0 = arith.constant 0 : i32
    %c0_i32_1 = arith.constant 0 : i32
    return %c0_i32, %c0_i32_0 : i32, i32
  }
  func.func @transform_3(%arg0: i32) -> (i32, i32) {
    %c0_i32 = arith.constant 0 : i32
    %c0_i32_0 = arith.constant 0 : i32
    %c0_i32_1 = arith.constant 0 : i32
    return %c0_i32, %c0_i32_0 : i32, i32
  }
  func.func @transform_4(%arg0: i32) -> (i32, i32) {
    %c0_i32 = arith.constant 0 : i32
    %c0_i32_0 = arith.constant 0 : i32
    %c0_i32_1 = arith.constant 0 : i32
    return %c0_i32, %c0_i32_0 : i32, i32
  }
  func.func @transform_5(%arg0: i32) -> (i32, i32) {
    %c0_i32 = arith.constant 0 : i32
    %c0_i32_0 = arith.constant 0 : i32
    %c0_i32_1 = arith.constant 0 : i32
    return %c0_i32, %c0_i32_0 : i32, i32
  }
  func.func @transform_6(%arg0: i32) -> (i32, i32) {
    %c0_i32 = arith.constant 0 : i32
    %c0_i32_0 = arith.constant 0 : i32
    %c0_i32_1 = arith.constant 0 : i32
    return %c0_i32, %c0_i32_0 : i32, i32
  }
  func.func @transform_7(%arg0: i32) -> (i32, i32) {
    %c0_i32 = arith.constant 0 : i32
    %c0_i32_0 = arith.constant 0 : i32
    return %c0_i32, %arg0 : i32, i32
  }
}

</mosaic_0001>

<bundles_post_ra>
// kernel: dqn_forward.1
= control target key start
LH: loop header
LB: loop body
LE: loop exit
PB: predicated region body
PF: predicated region fallthrough
CT: control target
= control target key end

     0   :  { %12 = vsyncpa [#allocation3], 0  ;;  %s404_s24 = smov [#allocation2]   ;;  %s480_s0 = inlined_call_operand.vmem [shape: f32[8,16], index: 0, kind: input, shape index: {}]   ;;  %s481_s1 = inlined_call_operand.vmem [shape: f32[16,128], index: 1, kind: input, shape index: {}]   ;;  %s482_s2 = inlined_call_operand.vmem [shape: f32[1,128], index: 2, kind: input, shape index: {}]   ;;  %s483_s3 = inlined_call_operand.hbm [shape: f32[128,128], index: 3, kind: input, shape index: {}]   ;;  %s484_s4 = inlined_call_operand.vmem [shape: f32[1,128], index: 4, kind: input, shape index: {}]   ;;  %s485_s5 = inlined_call_operand.vmem [shape: f32[2,128], index: 5, kind: input, shape index: {}]   ;;  %s486_s6 = inlined_call_operand.vmem [shape: f32[2,1], index: 6, kind: input, shape index: {}]   ;;  %s487_s7 = inlined_call_operand.vmem [shape: f32[2,8], index: 7, kind: output, shape index: {}]  }
   0x1   :  { %s24_s25 = sshll.u32 %s404_s24, 4  ;;  %s25_s25 = int_to_ptr.vmem [resolvable:$true] %s24_s25 }
   0x2   :  { %s390_s26 = scalar_lea.vmem %s25_s25, 2048  ;;  %p395_p1 = scmp.lt.s32.totalorder %s25_s25, %s25_s25 }
   0x3   :  { %p391_p0 = scmp.ne.s32.totalorder %s25_s25, %s390_s26  ;;  %p396_p2 = scmp.lt.s32.totalorder %s390_s26, %s390_s26 }
   0x5   :  { %p397_p3 = por %p396_p2, %p395_p1 }
   0x7   :  { %p398_p4 = pnand %p397_p3, %p391_p0 }
   0x9   :  { %401 = shalt.err (!%p398_p4)
}
   0xa   :  { %s405_s27 = smov 128   ;;  %s406_s28 = smov 8  }
   0xb   :  { %30 = dma.hbm_to_vmem [thread:$0]  %s483_s3, 2048, %s25_s25, [#allocation3], %s405_s27, %s405_s27, %s406_s28  }
   0xc   :  { %402 = dma.done.wait [#allocation3], 2048  }
   0xd   :  { %403 = vsyncadd [#allocation3], 4294965248  ;;  %v407_v0 = vmov 0.0   ;;  %vm408_vm0 = vmmov 0   ;;  %v42_v1 = vld [vmem:[%s481_s1 + $0x8] sm:$0xff]  ;;  %v41_v2 = vld [vmem:[%s481_s1] sm:$0xff] }
   0xe   :  { %328 = vmatprep.subr.mxu0 %v407_v0  ;;  %332 = vmatprep.mubr.msk.f32.mxu0 %vm408_vm0, %v407_v0  ;;  %v40_v3 = vld [vmem:[%s480_s0] sm:$0xff]  ;;  %vm50_vm1 = vcmask 130048   ;;  %v140_v4 = vld [vmem:[#allocation2 + $0x78] sm:$0xff]  ;;  %v139_v5 = vld [vmem:[#allocation2 + $0x70] sm:$0xff]  ;;  %v409_v26 = vmov 0   ;;  %vm296_vm2 = vcmask 58368  }
   0xf   :  { %335 = vmatprep.subr.mxu1 %v407_v0  ;;  %367 = vmatprep.mubr.msk.f32.mxu1 %vm408_vm0, %v407_v0  ;;  %v138_v6 = vld [vmem:[#allocation2 + $0x68] sm:$0xff]  ;;  %v137_v7 = vld [vmem:[#allocation2 + $0x60] sm:$0xff]  ;;  %v136_v8 = vld [vmem:[#allocation2 + $0x58] sm:$0xff] }
  0x10   :  { %329 = vmatpush3.msra.mxu0 %v42_v1  ;;  %336 = vmatpush3.msra.mxu1 %v140_v4  ;;  %v135_v9 = vld [vmem:[#allocation2 + $0x50] sm:$0xff]  ;;  %v134_v10 = vld [vmem:[#allocation2 + $0x48] sm:$0xff]  ;;  %v133_v11 = vld [vmem:[#allocation2 + $0x40] sm:$0xff] }
  0x11   :  { %330 = vmatprep.subr.mxu0 %v407_v0  ;;  %337 = vmatprep.subr.mxu1 %v407_v0  ;;  %v132_v12 = vld [vmem:[#allocation2 + $0x38] sm:$0xff]  ;;  %v131_v13 = vld [vmem:[#allocation2 + $0x30] sm:$0xff]  ;;  %v130_v14 = vld [vmem:[#allocation2 + $0x28] sm:$0xff] }
  0x12   :  { %331 = vmatpush3.msra.mxu0 %v41_v2  ;;  %338 = vmatpush3.msra.mxu1 %v139_v5  ;;  %v129_v15 = vld [vmem:[#allocation2 + $0x20] sm:$0xff]  ;;  %v128_v16 = vld [vmem:[#allocation2 + $0x18] sm:$0xff]  ;;  %v127_v17 = vld [vmem:[#allocation2 + $0x10] sm:$0xff] }
  0x13   :  { %333 = vmatmul.mubr.msk.f32.vlgmr.msra.gmra.mxu0 %vm50_vm1, %v40_v3  ;;  %339 = vmatprep.subr.mxu1 %v407_v0  ;;  %v126_v18 = vld [vmem:[#allocation2 + $0x8] sm:$0xff]  ;;  %v125_v19 = vld [vmem:[#allocation2] sm:$0xff] }
  0x14   :  { %370 = vmatprep.subr.mxu0 %v407_v0  ;;  %340 = vmatpush3.msra.mxu1 %v138_v6  ;;  %v303_v20 = vld [vmem:[%s482_s2] ss:$0 sm:$0xff] }
  0x15   :  { %372 = vmatprep.mubr.msk.f32.mxu0 %vm408_vm0, %v407_v0  ;;  %341 = vmatprep.subr.mxu1 %v407_v0  ;;  %v220_v25 = vld [vmem:[%s486_s6] sm:$0x3] }
  0x16   :  { %342 = vmatpush3.msra.mxu1 %v137_v7  ;;  %381 = vset.pattern.permute.xlu0 %v409_v26  ;;  %v305_v27 = vld [vmem:[%s484_s4] ss:$0 sm:$0xff] }
  0x17   :  { %343 = vmatprep.subr.mxu1 %v407_v0  ;;  %223 = vperm.xlu0 %381, %v220_v25   ;;  %v219_v32 = vld [vmem:[%s485_s5] sm:$0x3] }
  0x18   :  { %344 = vmatpush3.msra.mxu1 %v136_v8 }
  0x19   :  { %345 = vmatprep.subr.mxu1 %v407_v0 }
  0x1a   :  { %346 = vmatpush3.msra.mxu1 %v135_v9 }
  0x1b   :  { %347 = vmatprep.subr.mxu1 %v407_v0 }
  0x1c   :  { %348 = vmatpush3.msra.mxu1 %v134_v10 }
  0x1d   :  { %349 = vmatprep.subr.mxu1 %v407_v0 }
  0x1e   :  { %350 = vmatpush3.msra.mxu1 %v133_v11 }
  0x1f   :  { %351 = vmatprep.subr.mxu1 %v407_v0 }
  0x20   :  { %352 = vmatpush3.msra.mxu1 %v132_v12 }
  0x21   :  { %353 = vmatprep.subr.mxu1 %v407_v0 }
  0x22   :  { %354 = vmatpush3.msra.mxu1 %v131_v13 }
  0x23   :  { %355 = vmatprep.subr.mxu1 %v407_v0 }
  0x24   :  { %356 = vmatpush3.msra.mxu1 %v130_v14 }
  0x25   :  { %357 = vmatprep.subr.mxu1 %v407_v0 }
  0x26   :  { %358 = vmatpush3.msra.mxu1 %v129_v15 }
  0x27   :  { %359 = vmatprep.subr.mxu1 %v407_v0 }
  0x28   :  { %360 = vmatpush3.msra.mxu1 %v128_v16 }
  0x29   :  { %361 = vmatprep.subr.mxu1 %v407_v0 }
  0x2a   :  { %362 = vmatpush3.msra.mxu1 %v127_v17 }
  0x2b   :  { %363 = vmatprep.subr.mxu1 %v407_v0 }
  0x2c   :  { %364 = vmatpush3.msra.mxu1 %v126_v18 }
  0x2d   :  { %365 = vmatprep.subr.mxu1 %v407_v0 }
  0x2e   :  { %366 = vmatpush3.msra.mxu1 %v125_v19 }
  0x92   :  { %v224_v33 = vpop.permute.xlu0 %223 }
  0xd3   :  { %v120_v21 = vpop.f32.mrf.mxu0 }
  0xd4   :  { %v121_v22 = vadd.f32 %v303_v20, %v120_v21 }
  0xd5   :  { %v334_v23 = vpop.f32.mrf.mxu0 }
  0xd6   :  { %v124_v24 = vmax.f32 %v121_v22, 0.0 }
  0xd8   :  { %368 = vmatmul.mubr.f32.vlgmr.msra.gmra.mxu1 %v124_v24 }
 0x198   :  { %v214_v28 = vpop.f32.mrf.mxu1 }
 0x199   :  { %v215_v29 = vadd.f32 %v305_v27, %v214_v28 }
 0x19a   :  { %v369_v30 = vpop.f32.mrf.mxu1 }
 0x19b   :  { %v218_v31 = vmax.f32 %v215_v29, 0.0 }
 0x19d   :  { %371 = vmatpush3.xpose.msra.mxu0 %v218_v31 }
 0x1a0   :  { %373 = vmatmul.mubr.f32.vlgmr.msra.gmra.mxu0 %v219_v32 }
 0x260   :  { %v292_v34 = vpop.f32.mrf.mxu0 }
 0x261   :  { %v293_v35 = vadd.f32 %v292_v34, %v224_v33 }
 0x262   :  { %v374_v36 = vpop.f32.mrf.mxu0 }
 0x263   :  { %297 = vst.msk [vmem:[%s487_s7] sm:$0x3] %vm296_vm2, %v293_v35 }
 0x264   :  { %302 = vsyncpa [#allocation3], 1 }

</bundles_post_ra>
